<compile_context>
chip_gen: v6e
topology: v6e:2x2x1
jax: 0.10.0
libtpu: 0.0.40
codegen_flags: <defaults>
</compile_context>

<pallas_src>
import functools

import jax
import jax.numpy as jnp
from jax import lax
from jax.experimental import pallas as pl
from jax.experimental.pallas import tpu as pltpu

LN_EPS = 1e-5
PAD_N = 128  # lane-dense padded action dimension


def _round_up(x, m):
    return ((x + m - 1) // m) * m


def _actor_kernel(n_actions,
                  x_ref, w1_ref, b1_ref, g1_ref, be1_ref,
                  w2_ref, b2_ref, g2_ref, be2_ref,
                  w3_ref, b3_ref, o_ref):
    # fc1 (MXU, bf16 operands, fp32 accumulate) + LayerNorm + ReLU (VPU/XLU, fp32)
    x = x_ref[...].astype(jnp.bfloat16)
    h = jnp.dot(x, w1_ref[...], preferred_element_type=jnp.float32) + b1_ref[...]
    mu = jnp.mean(h, axis=-1, keepdims=True)
    var = jnp.mean(jnp.square(h - mu), axis=-1, keepdims=True)
    h = (h - mu) * lax.rsqrt(var + LN_EPS) * g1_ref[...] + be1_ref[...]
    h = jnp.maximum(h, 0.0)

    # fc2 + LayerNorm + ReLU
    h = jnp.dot(h.astype(jnp.bfloat16), w2_ref[...],
                preferred_element_type=jnp.float32) + b2_ref[...]
    mu = jnp.mean(h, axis=-1, keepdims=True)
    var = jnp.mean(jnp.square(h - mu), axis=-1, keepdims=True)
    h = (h - mu) * lax.rsqrt(var + LN_EPS) * g2_ref[...] + be2_ref[...]
    h = jnp.maximum(h, 0.0)

    # action head: padded to PAD_N lanes, masked softmax over the real n_actions columns.
    logits = jnp.dot(h.astype(jnp.bfloat16), w3_ref[...],
                     preferred_element_type=jnp.float32) + b3_ref[...]
    lane = lax.broadcasted_iota(jnp.int32, logits.shape, dimension=1)
    logits = jnp.where(lane < n_actions, logits, -1e30)
    m = jnp.max(logits, axis=-1, keepdims=True)
    e = jnp.exp(logits - m)
    probs = e / jnp.sum(e, axis=-1, keepdims=True)
    o_ref[...] = probs.astype(o_ref.dtype)


def actor_forward(state, params, *, n_actions=3, batch_tile=512):
    """state: (B, input_dims) float32 -> action probabilities (B, n_actions) float32."""
    w1, b1, g1, be1, w2, b2, g2, be2, w3, b3 = params
    B, D = state.shape
    fc1 = w1.shape[1]
    fc2 = w2.shape[1]

    # bf16 matmul operands (fp32 accumulation happens in-kernel).
    w1b = w1.astype(jnp.bfloat16)
    w2b = w2.astype(jnp.bfloat16)
    # Zero-pad the action head to PAD_N output lanes so the last matmul and the output
    # writeback are lane-dense; padded logits are masked to -inf inside the kernel.
    w3p = jnp.zeros((fc2, PAD_N), jnp.float32).at[:, :n_actions].set(w3).astype(jnp.bfloat16)
    b3p = jnp.zeros((1, PAD_N), jnp.float32).at[:, :n_actions].set(b3)

    # Large MXU-friendly batch tile, without over-padding small batches.
    tile = min(batch_tile, _round_up(B, 8))
    tile = max(8, _round_up(tile, 8))
    Bp = _round_up(B, tile)
    # v7x has 2 TensorCores: when the batch is large enough, prefer >=2 grid steps
    # (keeps each tile >=256 rows, still MXU-filling). No effect on v5e/v6e.
    if Bp // tile < 2 and tile >= 512:
        tile = tile // 2
        Bp = _round_up(B, tile)

    if Bp != B:
        state = jnp.pad(state, ((0, Bp - B), (0, 0)))
    grid = (Bp // tile,)

    # Weights/biases/LN params: one full-array block, resident in VMEM across all batch tiles.
    full = lambda shape: pl.BlockSpec(shape, lambda i: (0, 0))
    kernel = functools.partial(_actor_kernel, n_actions)

    out = pl.pallas_call(
        kernel,
        out_shape=jax.ShapeDtypeStruct((Bp, PAD_N), jnp.float32),
        grid_spec=pltpu.PrefetchScalarGridSpec(
            num_scalar_prefetch=0,
            grid=grid,
            in_specs=[
                pl.BlockSpec((tile, D), lambda i: (i, 0)),          # state tile
                full((D, fc1)), full((1, fc1)), full((1, fc1)), full((1, fc1)),
                full((fc1, fc2)), full((1, fc2)), full((1, fc2)), full((1, fc2)),
                full((fc2, PAD_N)), full((1, PAD_N)),
            ],
            out_specs=pl.BlockSpec((tile, PAD_N), lambda i: (i, 0)),
        ),
        compiler_params=pltpu.CompilerParams(
            dimension_semantics=("parallel",),
        ),
    )(state, w1b, b1, g1, be1, w2b, b2, g2, be2, w3p, b3p)

    return out[:B, :n_actions]


def init_params(key, input_dims, fc1_dims=256, fc2_dims=256, n_actions=3):
    """PyTorch-style init: Linear U(-1/sqrt(fan_in), 1/sqrt(fan_in)); LayerNorm gamma=1, beta=0."""
    ks = jax.random.split(key, 6)

    def lin(kw, kb, fan_in, fan_out):
        bound = 1.0 / jnp.sqrt(jnp.float32(fan_in))
        w = jax.random.uniform(kw, (fan_in, fan_out), jnp.float32, -bound, bound)
        b = jax.random.uniform(kb, (1, fan_out), jnp.float32, -bound, bound)
        return w, b

    w1, b1 = lin(ks[0], ks[1], input_dims, fc1_dims)
    w2, b2 = lin(ks[2], ks[3], fc1_dims, fc2_dims)
    w3, b3 = lin(ks[4], ks[5], fc2_dims, n_actions)
    g1 = jnp.ones((1, fc1_dims), jnp.float32)
    be1 = jnp.zeros((1, fc1_dims), jnp.float32)
    g2 = jnp.ones((1, fc2_dims), jnp.float32)
    be2 = jnp.zeros((1, fc2_dims), jnp.float32)
    return (w1, b1, g1, be1, w2, b2, g2, be2, w3, b3)


def actor_ref(state, params):
    """Pure-JAX fp32 reference matching the PyTorch Sequential."""
    w1, b1, g1, be1, w2, b2, g2, be2, w3, b3 = params

    def ln(h, g, b):
        mu = jnp.mean(h, axis=-1, keepdims=True)
        var = jnp.mean(jnp.square(h - mu), axis=-1, keepdims=True)
        return (h - mu) / jnp.sqrt(var + LN_EPS) * g + b

    h = jnp.maximum(ln(state @ w1 + b1, g1, be1), 0.0)
    h = jnp.maximum(ln(h @ w2 + b2, g2, be2), 0.0)
    logits = h @ w3 + b3
    return jax.nn.softmax(logits, axis=-1)


if __name__ == "__main__":
    key = jax.random.PRNGKey(0)
    k_params, k_state = jax.random.split(key)

    B, input_dims, n_actions = 8, 16, 3
    params = init_params(k_params, input_dims, fc1_dims=256, fc2_dims=256, n_actions=n_actions)
    state = jax.random.normal(k_state, (B, input_dims), jnp.float32)

    probs = actor_forward(state, params, n_actions=n_actions)
    probs = jax.block_until_ready(probs)

    ref = actor_ref(state, params)
    assert probs.shape == (B, n_actions), probs.shape
    # bf16 matmul operands vs fp32 reference -> loose tolerance.
    assert jnp.allclose(probs, ref, atol=2e-2, rtol=2e-2), (
        f"mismatch: max abs err {jnp.max(jnp.abs(probs - ref))}"
    )
    assert jnp.allclose(jnp.sum(probs, axis=-1), 1.0, atol=1e-3), "probs do not sum to 1"

    # TODO(synk): torch.distributions.Categorical (sampling / log_prob) is host-side logic,
    # not part of the kernel; the kernel returns the categorical probabilities.
    print("KERNEL_OK")
</pallas_src>

<mosaic_0001>
module attributes {stable_mosaic.version = 11 : i64} {
  func.func @_actor_kernel(%arg0: i32, %arg1: memref<8x16xf32, #tpu.memory_space<vmem>>, %arg2: memref<16x256xbf16, #tpu.memory_space<vmem>>, %arg3: memref<1x256xf32, #tpu.memory_space<vmem>>, %arg4: memref<1x256xf32, #tpu.memory_space<vmem>>, %arg5: memref<1x256xf32, #tpu.memory_space<vmem>>, %arg6: memref<256x256xbf16, #tpu.memory_space<vmem>>, %arg7: memref<1x256xf32, #tpu.memory_space<vmem>>, %arg8: memref<1x256xf32, #tpu.memory_space<vmem>>, %arg9: memref<1x256xf32, #tpu.memory_space<vmem>>, %arg10: memref<256x128xbf16, #tpu.memory_space<vmem>>, %arg11: memref<1x128xf32, #tpu.memory_space<vmem>>, %arg12: memref<8x128xf32, #tpu.memory_space<vmem>>) attributes {dimension_semantics = [#tpu.dimension_semantics<parallel>], iteration_bounds = array<i64: 1>, scalar_prefetch = 0 : i64, scratch_operands = 0 : i64, tpu.core_type = #tpu.core_type<tc>, window_params = [{transform_indices = @transform_0, window_bounds = array<i64: 8, 16>}, {pipeline_mode = #tpu.pipeline_mode<synchronous>, transform_indices = @transform_1, window_bounds = array<i64: 16, 256>}, {pipeline_mode = #tpu.pipeline_mode<synchronous>, transform_indices = @transform_2, window_bounds = array<i64: 1, 256>}, {pipeline_mode = #tpu.pipeline_mode<synchronous>, transform_indices = @transform_3, window_bounds = array<i64: 1, 256>}, {pipeline_mode = #tpu.pipeline_mode<synchronous>, transform_indices = @transform_4, window_bounds = array<i64: 1, 256>}, {pipeline_mode = #tpu.pipeline_mode<synchronous>, transform_indices = @transform_5, window_bounds = array<i64: 256, 256>}, {pipeline_mode = #tpu.pipeline_mode<synchronous>, transform_indices = @transform_6, window_bounds = array<i64: 1, 256>}, {pipeline_mode = #tpu.pipeline_mode<synchronous>, transform_indices = @transform_7, window_bounds = array<i64: 1, 256>}, {pipeline_mode = #tpu.pipeline_mode<synchronous>, transform_indices = @transform_8, window_bounds = array<i64: 1, 256>}, {pipeline_mode = #tpu.pipeline_mode<synchronous>, transform_indices = @transform_9, window_bounds = array<i64: 256, 128>}, {pipeline_mode = #tpu.pipeline_mode<synchronous>, transform_indices = @transform_10, window_bounds = array<i64: 1, 128>}, {transform_indices = @transform_11, window_bounds = array<i64: 8, 128>}]} {
    %c0 = arith.constant 0 : index
    %c0_0 = arith.constant 0 : index
    %0 = vector.load %arg1[%c0, %c0_0] : memref<8x16xf32, #tpu.memory_space<vmem>>, vector<8x16xf32>
    %1 = arith.truncf %0 : vector<8x16xf32> to vector<8x16xbf16>
    %c0_1 = arith.constant 0 : index
    %c0_2 = arith.constant 0 : index
    %2 = vector.load %arg2[%c0_1, %c0_2] : memref<16x256xbf16, #tpu.memory_space<vmem>>, vector<16x256xbf16>
    %cst = arith.constant dense<0.000000e+00> : vector<8x256xf32>
    %3 = tpu.matmul %1, %2, %cst {dimension_numbers = #tpu.dot_dimension_numbers<[1], [0], [0], [1], [0, 0, 1, 1], [], []>} : vector<8x16xbf16>, vector<16x256xbf16>, vector<8x256xf32> -> vector<8x256xf32>
    %c0_3 = arith.constant 0 : index
    %c0_4 = arith.constant 0 : index
    %4 = vector.load %arg3[%c0_3, %c0_4] : memref<1x256xf32, #tpu.memory_space<vmem>>, vector<1x256xf32>
    %5 = vector.broadcast %4 : vector<1x256xf32> to vector<8x256xf32>
    %6 = arith.addf %3, %5 : vector<8x256xf32>
    %cst_5 = arith.constant dense<0.000000e+00> : vector<8xf32>
    %7 = vector.multi_reduction <add>, %6, %cst_5 [1] : vector<8x256xf32> to vector<8xf32>
    %8 = vector.shape_cast %7 : vector<8xf32> to vector<8x1xf32>
    %cst_6 = arith.constant 2.560000e+02 : f32
    %9 = vector.broadcast %cst_6 : f32 to vector<8x1xf32>
    %10 = arith.divf %8, %9 : vector<8x1xf32>
    %11 = vector.broadcast %10 : vector<8x1xf32> to vector<8x256xf32>
    %12 = arith.subf %6, %11 : vector<8x256xf32>
    %13 = arith.mulf %12, %12 : vector<8x256xf32>
    %cst_7 = arith.constant dense<0.000000e+00> : vector<8xf32>
    %14 = vector.multi_reduction <add>, %13, %cst_7 [1] : vector<8x256xf32> to vector<8xf32>
    %15 = vector.shape_cast %14 : vector<8xf32> to vector<8x1xf32>
    %cst_8 = arith.constant 2.560000e+02 : f32
    %16 = vector.broadcast %cst_8 : f32 to vector<8x1xf32>
    %17 = arith.divf %15, %16 : vector<8x1xf32>
    %18 = vector.broadcast %10 : vector<8x1xf32> to vector<8x256xf32>
    %19 = arith.subf %6, %18 : vector<8x256xf32>
    %cst_9 = arith.constant 9.99999974E-6 : f32
    %20 = vector.broadcast %cst_9 : f32 to vector<8x1xf32>
    %21 = arith.addf %17, %20 : vector<8x1xf32>
    %22 = math.rsqrt %21 : vector<8x1xf32>
    %23 = vector.broadcast %22 : vector<8x1xf32> to vector<8x256xf32>
    %24 = arith.mulf %19, %23 : vector<8x256xf32>
    %c0_10 = arith.constant 0 : index
    %c0_11 = arith.constant 0 : index
    %25 = vector.load %arg4[%c0_10, %c0_11] : memref<1x256xf32, #tpu.memory_space<vmem>>, vector<1x256xf32>
    %26 = vector.broadcast %25 : vector<1x256xf32> to vector<8x256xf32>
    %27 = arith.mulf %24, %26 : vector<8x256xf32>
    %c0_12 = arith.constant 0 : index
    %c0_13 = arith.constant 0 : index
    %28 = vector.load %arg5[%c0_12, %c0_13] : memref<1x256xf32, #tpu.memory_space<vmem>>, vector<1x256xf32>
    %29 = vector.broadcast %28 : vector<1x256xf32> to vector<8x256xf32>
    %30 = arith.addf %27, %29 : vector<8x256xf32>
    %cst_14 = arith.constant 0.000000e+00 : f32
    %31 = vector.broadcast %cst_14 : f32 to vector<8x256xf32>
    %32 = arith.maximumf %30, %31 : vector<8x256xf32>
    %33 = arith.truncf %32 : vector<8x256xf32> to vector<8x256xbf16>
    %c0_15 = arith.constant 0 : index
    %c0_16 = arith.constant 0 : index
    %34 = vector.load %arg6[%c0_15, %c0_16] : memref<256x256xbf16, #tpu.memory_space<vmem>>, vector<256x256xbf16>
    %cst_17 = arith.constant dense<0.000000e+00> : vector<8x256xf32>
    %35 = tpu.matmul %33, %34, %cst_17 {dimension_numbers = #tpu.dot_dimension_numbers<[1], [0], [0], [1], [0, 0, 1, 1], [], []>} : vector<8x256xbf16>, vector<256x256xbf16>, vector<8x256xf32> -> vector<8x256xf32>
    %c0_18 = arith.constant 0 : index
    %c0_19 = arith.constant 0 : index
    %36 = vector.load %arg7[%c0_18, %c0_19] : memref<1x256xf32, #tpu.memory_space<vmem>>, vector<1x256xf32>
    %37 = vector.broadcast %36 : vector<1x256xf32> to vector<8x256xf32>
    %38 = arith.addf %35, %37 : vector<8x256xf32>
    %cst_20 = arith.constant dense<0.000000e+00> : vector<8xf32>
    %39 = vector.multi_reduction <add>, %38, %cst_20 [1] : vector<8x256xf32> to vector<8xf32>
    %40 = vector.shape_cast %39 : vector<8xf32> to vector<8x1xf32>
    %cst_21 = arith.constant 2.560000e+02 : f32
    %41 = vector.broadcast %cst_21 : f32 to vector<8x1xf32>
    %42 = arith.divf %40, %41 : vector<8x1xf32>
    %43 = vector.broadcast %42 : vector<8x1xf32> to vector<8x256xf32>
    %44 = arith.subf %38, %43 : vector<8x256xf32>
    %45 = arith.mulf %44, %44 : vector<8x256xf32>
    %cst_22 = arith.constant dense<0.000000e+00> : vector<8xf32>
    %46 = vector.multi_reduction <add>, %45, %cst_22 [1] : vector<8x256xf32> to vector<8xf32>
    %47 = vector.shape_cast %46 : vector<8xf32> to vector<8x1xf32>
    %cst_23 = arith.constant 2.560000e+02 : f32
    %48 = vector.broadcast %cst_23 : f32 to vector<8x1xf32>
    %49 = arith.divf %47, %48 : vector<8x1xf32>
    %50 = vector.broadcast %42 : vector<8x1xf32> to vector<8x256xf32>
    %51 = arith.subf %38, %50 : vector<8x256xf32>
    %cst_24 = arith.constant 9.99999974E-6 : f32
    %52 = vector.broadcast %cst_24 : f32 to vector<8x1xf32>
    %53 = arith.addf %49, %52 : vector<8x1xf32>
    %54 = math.rsqrt %53 : vector<8x1xf32>
    %55 = vector.broadcast %54 : vector<8x1xf32> to vector<8x256xf32>
    %56 = arith.mulf %51, %55 : vector<8x256xf32>
    %c0_25 = arith.constant 0 : index
    %c0_26 = arith.constant 0 : index
    %57 = vector.load %arg8[%c0_25, %c0_26] : memref<1x256xf32, #tpu.memory_space<vmem>>, vector<1x256xf32>
    %58 = vector.broadcast %57 : vector<1x256xf32> to vector<8x256xf32>
    %59 = arith.mulf %56, %58 : vector<8x256xf32>
    %c0_27 = arith.constant 0 : index
    %c0_28 = arith.constant 0 : index
    %60 = vector.load %arg9[%c0_27, %c0_28] : memref<1x256xf32, #tpu.memory_space<vmem>>, vector<1x256xf32>
    %61 = vector.broadcast %60 : vector<1x256xf32> to vector<8x256xf32>
    %62 = arith.addf %59, %61 : vector<8x256xf32>
    %cst_29 = arith.constant 0.000000e+00 : f32
    %63 = vector.broadcast %cst_29 : f32 to vector<8x256xf32>
    %64 = arith.maximumf %62, %63 : vector<8x256xf32>
    %65 = arith.truncf %64 : vector<8x256xf32> to vector<8x256xbf16>
    %c0_30 = arith.constant 0 : index
    %c0_31 = arith.constant 0 : index
    %66 = vector.load %arg10[%c0_30, %c0_31] : memref<256x128xbf16, #tpu.memory_space<vmem>>, vector<256x128xbf16>
    %cst_32 = arith.constant dense<0.000000e+00> : vector<8x128xf32>
    %67 = tpu.matmul %65, %66, %cst_32 {dimension_numbers = #tpu.dot_dimension_numbers<[1], [0], [0], [1], [0, 0, 1, 1], [], []>} : vector<8x256xbf16>, vector<256x128xbf16>, vector<8x128xf32> -> vector<8x128xf32>
    %c0_33 = arith.constant 0 : index
    %c0_34 = arith.constant 0 : index
    %68 = vector.load %arg11[%c0_33, %c0_34] : memref<1x128xf32, #tpu.memory_space<vmem>>, vector<1x128xf32>
    %69 = vector.broadcast %68 : vector<1x128xf32> to vector<8x128xf32>
    %70 = arith.addf %67, %69 : vector<8x128xf32>
    %71 = tpu.iota {dimensions = array<i32: 1>} : vector<8x128xi32>
    %c3_i32 = arith.constant 3 : i32
    %72 = vector.broadcast %c3_i32 : i32 to vector<8x128xi32>
    %73 = arith.cmpi slt, %71, %72 : vector<8x128xi32>
    %cst_35 = arith.constant -1.000000e+30 : f32
    %74 = vector.broadcast %cst_35 : f32 to vector<8x128xf32>
    %75 = arith.select %73, %70, %74 : vector<8x128xi1>, vector<8x128xf32>
    %cst_36 = arith.constant dense<0xFF800000> : vector<8xf32>
    %76 = vector.multi_reduction <maximumf>, %75, %cst_36 [1] : vector<8x128xf32> to vector<8xf32>
    %77 = vector.shape_cast %76 : vector<8xf32> to vector<8x1xf32>
    %78 = vector.broadcast %77 : vector<8x1xf32> to vector<8x128xf32>
    %79 = arith.subf %75, %78 : vector<8x128xf32>
    %80 = math.exp %79 : vector<8x128xf32>
    %cst_37 = arith.constant dense<0.000000e+00> : vector<8xf32>
    %81 = vector.multi_reduction <add>, %80, %cst_37 [1] : vector<8x128xf32> to vector<8xf32>
    %82 = vector.shape_cast %81 : vector<8xf32> to vector<8x1xf32>
    %83 = vector.broadcast %82 : vector<8x1xf32> to vector<8x128xf32>
    %84 = arith.divf %80, %83 : vector<8x128xf32>
    %c0_38 = arith.constant 0 : index
    %c0_39 = arith.constant 0 : index
    %85 = vector.load %arg12[%c0_38, %c0_39] : memref<8x128xf32, #tpu.memory_space<vmem>>, vector<8x128xf32>
    tpu.vector_store %arg12[%c0_38, %c0_39], %84 {strides = array<i32>} : memref<8x128xf32, #tpu.memory_space<vmem>>, vector<8x128xf32>,
    return
  }
  func.func @transform_0(%arg0: i32) -> (i32, i32) {
    %c0_i32 = arith.constant 0 : i32
    %c0_i32_0 = arith.constant 0 : i32
    return %arg0, %c0_i32 : i32, i32
  }
  func.func @transform_1(%arg0: i32) -> (i32, i32) {
    %c0_i32 = arith.constant 0 : i32
    %c0_i32_0 = arith.constant 0 : i32
    %c0_i32_1 = arith.constant 0 : i32
    return %c0_i32, %c0_i32_0 : i32, i32
  }
  func.func @transform_2(%arg0: i32) -> (i32, i32) {
    %c0_i32 = arith.constant 0 : i32
    %c0_i32_0 = arith.constant 0 : i32
    %c0_i32_1 = arith.constant 0 : i32
    return %c0_i32, %c0_i32_0 : i32, i32
  }
  func.func @transform_3(%arg0: i32) -> (i32, i32) {
    %c0_i32 = arith.constant 0 : i32
    %c0_i32_0 = arith.constant 0 : i32
    %c0_i32_1 = arith.constant 0 : i32
    return %c0_i32, %c0_i32_0 : i32, i32
  }
  func.func @transform_4(%arg0: i32) -> (i32, i32) {
    %c0_i32 = arith.constant 0 : i32
    %c0_i32_0 = arith.constant 0 : i32
    %c0_i32_1 = arith.constant 0 : i32
    return %c0_i32, %c0_i32_0 : i32, i32
  }
  func.func @transform_5(%arg0: i32) -> (i32, i32) {
    %c0_i32 = arith.constant 0 : i32
    %c0_i32_0 = arith.constant 0 : i32
    %c0_i32_1 = arith.constant 0 : i32
    return %c0_i32, %c0_i32_0 : i32, i32
  }
  func.func @transform_6(%arg0: i32) -> (i32, i32) {
    %c0_i32 = arith.constant 0 : i32
    %c0_i32_0 = arith.constant 0 : i32
    %c0_i32_1 = arith.constant 0 : i32
    return %c0_i32, %c0_i32_0 : i32, i32
  }
  func.func @transform_7(%arg0: i32) -> (i32, i32) {
    %c0_i32 = arith.constant 0 : i32
    %c0_i32_0 = arith.constant 0 : i32
    %c0_i32_1 = arith.constant 0 : i32
    return %c0_i32, %c0_i32_0 : i32, i32
  }
  func.func @transform_8(%arg0: i32) -> (i32, i32) {
    %c0_i32 = arith.constant 0 : i32
    %c0_i32_0 = arith.constant 0 : i32
    %c0_i32_1 = arith.constant 0 : i32
    return %c0_i32, %c0_i32_0 : i32, i32
  }
  func.func @transform_9(%arg0: i32) -> (i32, i32) {
    %c0_i32 = arith.constant 0 : i32
    %c0_i32_0 = arith.constant 0 : i32
    %c0_i32_1 = arith.constant 0 : i32
    return %c0_i32, %c0_i32_0 : i32, i32
  }
  func.func @transform_10(%arg0: i32) -> (i32, i32) {
    %c0_i32 = arith.constant 0 : i32
    %c0_i32_0 = arith.constant 0 : i32
    %c0_i32_1 = arith.constant 0 : i32
    return %c0_i32, %c0_i32_0 : i32, i32
  }
  func.func @transform_11(%arg0: i32) -> (i32, i32) {
    %c0_i32 = arith.constant 0 : i32
    %c0_i32_0 = arith.constant 0 : i32
    return %arg0, %c0_i32 : i32, i32
  }
}

</mosaic_0001>

<bundles_post_ra>
// kernel: tpu_custom_call.1
= control target key start
LH: loop header
LB: loop body
LE: loop exit
PB: predicated region body
PF: predicated region fallthrough
CT: control target
= control target key end

     0   :  { %16 = vsyncpa [#allocation3], 0  ;;  %s1103_s0 = inlined_call_operand.hbm [shape: f32[8,16], index: 0, kind: input, shape index: {}]   ;;  %s1104_s1 = inlined_call_operand.hbm [shape: bf16[16,256], index: 1, kind: input, shape index: {}]   ;;  %s1105_s2 = inlined_call_operand.vmem [shape: f32[1,256], index: 2, kind: input, shape index: {}]   ;;  %s1106_s3 = inlined_call_operand.vmem [shape: f32[1,256], index: 3, kind: input, shape index: {}]   ;;  %s1107_s4 = inlined_call_operand.vmem [shape: f32[1,256], index: 4, kind: input, shape index: {}]   ;;  %s1108_s5 = inlined_call_operand.hbm [shape: bf16[256,256], index: 5, kind: input, shape index: {}]   ;;  %s1109_s6 = inlined_call_operand.vmem [shape: f32[1,256], index: 6, kind: input, shape index: {}]   ;;  %s1110_s7 = inlined_call_operand.vmem [shape: f32[1,256], index: 7, kind: input, shape index: {}]   ;;  %s1111_s8 = inlined_call_operand.vmem [shape: f32[1,256], index: 8, kind: input, shape index: {}]   ;;  %s1112_s9 = inlined_call_operand.hbm [shape: bf16[256,128], index: 9, kind: input, shape index: {}]   ;;  %s1113_s10 = inlined_call_operand.vmem [shape: f32[1,128], index: 10, kind: input, shape index: {}]   ;;  %s1114_s11 = inlined_call_operand.hbm [shape: f32[8,128], index: 11, kind: output, shape index: {}]  }
   0x1   :  { %17 = vsyncpa [#allocation6], 0 }
   0x2   :  { %18 = vsyncpa [#allocation9], 0 }
   0x3   :  { %19 = vsyncpa [#allocation4], 0  ;;  %s979_s17 = smov [#allocation5]  }
   0x4   :  { %s35_s18 = sshll.u32 %s979_s17, 4  ;;  %s36_s18 = int_to_ptr.vmem [resolvable:$true] %s35_s18 }
   0x5   :  { %s879_s19 = scalar_lea.vmem %s36_s18, 256  ;;  %p884_p1 = scmp.lt.s32.totalorder %s36_s18, %s36_s18 }
   0x6   :  { %p880_p0 = scmp.ne.s32.totalorder %s36_s18, %s879_s19  ;;  %p885_p2 = scmp.lt.s32.totalorder %s879_s19, %s879_s19 }
   0x8   :  { %p886_p3 = por %p885_p2, %p884_p1 }
   0xa   :  { %p887_p4 = pnand %p886_p3, %p880_p0 }
   0xc   :  { %890 = shalt.err (!%p887_p4)
}
   0xd   :  { %s980_s20 = smov 128   ;;  %s981_s21 = smov 8  }
   0xe   :  { %41 = dma.hbm_to_vmem [thread:$0]  %s1104_s1, 256, %s36_s18, [#allocation6], %s980_s20, %s980_s20, %s981_s21  }
   0xf   :  { %s982_s24 = smov [#allocation2]   ;;  %s983_s26 = smov [#allocation7]  }
  0x10   :  { %s26_s25 = sshll.u32 %s982_s24, 4  ;;  %s53_s27 = sshll.u32 %s983_s26, 4  ;;  %s27_s25 = int_to_ptr.vmem [resolvable:$true] %s26_s25  ;;  %s54_s27 = int_to_ptr.vmem [resolvable:$true] %s53_s27 }
  0x11   :  { %s899_s28 = scalar_lea.vmem %s27_s25, 128  ;;  %p904_p6 = scmp.lt.s32.totalorder %s27_s25, %s27_s25 }
  0x12   :  { %p900_p5 = scmp.ne.s32.totalorder %s27_s25, %s899_s28  ;;  %p905_p7 = scmp.lt.s32.totalorder %s899_s28, %s899_s28 }
  0x14   :  { %p906_p8 = por %p905_p7, %p904_p6 }
  0x16   :  { %p907_p9 = pnand %p906_p8, %p900_p5 }
  0x18   :  { %910 = shalt.err (!%p907_p9)
}
  0x19   :  { %29 = dma.hbm_to_vmem [thread:$0]  %s1103_s0, 128, %s27_s25, [#allocation3]  }
  0x1a   :  { %s919_s12 = scalar_lea.vmem %s54_s27, 4096  ;;  %p924_p11 = scmp.lt.s32.totalorder %s54_s27, %s54_s27 }
  0x1b   :  { %p920_p10 = scmp.ne.s32.totalorder %s54_s27, %s919_s12  ;;  %p925_p12 = scmp.lt.s32.totalorder %s919_s12, %s919_s12 }
  0x1d   :  { %p926_p13 = por %p925_p12, %p924_p11 }
  0x1f   :  { %p927_p0 = pnand %p926_p13, %p920_p10 }
  0x21   :  { %930 = shalt.err (!%p927_p0)
}
  0x22   :  { %59 = dma.hbm_to_vmem [thread:$0]  %s1108_s5, 4096, %s54_s27, [#allocation6], %s980_s20, %s980_s20, %s981_s21  }
  0x23   :  { %s984_s14 = smov [#allocation8]  }
  0x24   :  { %s71_s15 = sshll.u32 %s984_s14, 4  ;;  %s72_s15 = int_to_ptr.vmem [resolvable:$true] %s71_s15 }
  0x25   :  { %s939_s16 = scalar_lea.vmem %s72_s15, 2048  ;;  %p944_p2 = scmp.lt.s32.totalorder %s72_s15, %s72_s15 }
  0x26   :  { %p940_p1 = scmp.ne.s32.totalorder %s72_s15, %s939_s16  ;;  %p945_p3 = scmp.lt.s32.totalorder %s939_s16, %s939_s16 }
  0x28   :  { %p946_p4 = por %p945_p3, %p944_p2 }
  0x2a   :  { %p947_p5 = pnand %p946_p4, %p940_p1 }
  0x2c   :  { %950 = shalt.err (!%p947_p5)
}
  0x2d   :  { %s985_s0 = smov 64   ;;  %s986_s17 = smov 4  }
  0x2e   :  { %77 = dma.hbm_to_vmem [thread:$0]  %s1112_s9, 2048, %s72_s15, [#allocation9], %s985_s0, %s985_s0, %s986_s17  }
  0x2f   :  { %971 = dma.done.wait [#allocation3], 128  }
  0x30   :  { %972 = vsyncadd [#allocation3], 4294967168 }
  0x31   :  { %973 = dma.done.wait [#allocation6], 4352  }
  0x32   :  { %974 = vsyncadd [#allocation6], 4294962944 }
  0x33   :  { %975 = dma.done.wait [#allocation9], 2048  }
  0x34   :  { %976 = vsyncadd [#allocation9], 4294965248  ;;  %v987_v0 = vmov 0   ;;  %v796_v1 = vld [vmem:[#allocation5 + $0x4] ss:$8 sps:$4 sm:$0xff]   ;;  %v93_v3 = vld [vmem:[#allocation2] sm:$0xff]  ;;  %v99_v5 = vlaneseq }
  0x35   :  { %155 = vmatprep.mubr.bf16.mxu0 %v987_v0  ;;  %v798_v2 = vld [vmem:[#allocation5] ss:$8 sps:$4 sm:$0xff]   ;;  %137 = vmatprep.subr.bf16.mxu0 %v796_v1  ;;  %v94_v4 = vpack.c.bf16 %v93_v3, %v93_v3  ;;  %vm119_vm0 = vcmask 130048   ;;  %v97_v9 = vld [vmem:[%s1105_s2] sm:$0x3]  ;;  %s988_s26 = smov [#allocation10]  }
  0x36   :  { %138 = vmatpush1.bf16.msra.mxu0 %v798_v2  ;;  %v100_v6 = vshrl.u32 %v99_v5, 7  ;;  %v799_v19 = vld [vmem:[#allocation7 + $0x74] ss:$8 sps:$4 sm:$0xff]   ;;  %v801_v20 = vld [vmem:[#allocation7 + $0x70] ss:$8 sps:$4 sm:$0xff]   ;;  %s701_s27 = sshll.u32 %s988_s26, 4  ;;  %s702_s27 = int_to_ptr.vmem [resolvable:$true] %s701_s27 }
  0x37   :  { %v802_v21 = vld [vmem:[#allocation7 + $0x64] ss:$8 sps:$4 sm:$0xff]   ;;  %417 = vmatprep.subr.bf16.mxu1 %v799_v19  ;;  %v804_v22 = vld [vmem:[#allocation7 + $0x60] ss:$8 sps:$4 sm:$0xff]   ;;  %v805_v23 = vld [vmem:[#allocation7 + $0x54] ss:$8 sps:$4 sm:$0xff]   ;;  %p956_p7 = scmp.lt.s32.totalorder %s702_s27, %s702_s27 }
  0x38   :  { %v1062_v7 = vsub.s32 0, %v100_v6  ;;  %v1064_v8 = vsub.s32 1, %v100_v6  ;;  %418 = vmatpush1.bf16.msra.mxu1 %v801_v20  ;;  %v807_v24 = vld [vmem:[#allocation7 + $0x50] ss:$8 sps:$4 sm:$0xff]   ;;  %v808_v25 = vld [vmem:[#allocation7 + $0x44] ss:$8 sps:$4 sm:$0xff]  }
  0x39   :  { %714 = vmatmul.mubr.msk.bf16.vlgmr.msra.gmra.mxu0 %vm119_vm0, %v94_v4  ;;  %419 = vmatprep.subr.bf16.mxu1 %v802_v21  ;;  %v810_v26 = vld [vmem:[#allocation7 + $0x40] ss:$8 sps:$4 sm:$0xff]   ;;  %v811_v27 = vld [vmem:[#allocation7 + $0x34] ss:$8 sps:$4 sm:$0xff]   ;;  %v813_v28 = vld [vmem:[#allocation7 + $0x30] ss:$8 sps:$4 sm:$0xff]  }
  0x3a   :  { %v102_v10 = vrot.slane %v97_v9, %v1062_v7  ;;  %v106_v11 = vrot.slane %v97_v9, %v1064_v8  ;;  %v814_v29 = vld [vmem:[#allocation7 + $0x24] ss:$8 sps:$4 sm:$0xff]   ;;  %v816_v30 = vld [vmem:[#allocation7 + $0x20] ss:$8 sps:$4 sm:$0xff]   ;;  %v817_v31 = vld [vmem:[#allocation7 + $0x14] ss:$8 sps:$4 sm:$0xff]  }
  0x3b   :  { %v819_v32 = vld [vmem:[#allocation7 + $0x10] ss:$8 sps:$4 sm:$0xff]   ;;  %v820_v33 = vld [vmem:[#allocation7 + $0x4] ss:$8 sps:$4 sm:$0xff]   ;;  %v822_v34 = vld [vmem:[#allocation7] ss:$8 sps:$4 sm:$0xff]  }
  0x3c   :  { %420 = vmatpush1.bf16.msra.mxu1 %v804_v22  ;;  %v823_v35 = vld [vmem:[#allocation7 + $0xf4] ss:$8 sps:$4 sm:$0xff]   ;;  %v825_v36 = vld [vmem:[#allocation7 + $0xf0] ss:$8 sps:$4 sm:$0xff]   ;;  %v826_v44 = vld [vmem:[#allocation7 + $0xe4] ss:$8 sps:$4 sm:$0xff]  }
  0x3d   :  { %421 = vmatprep.subr.bf16.mxu1 %v805_v23  ;;  %v828_v45 = vld [vmem:[#allocation7 + $0xe0] ss:$8 sps:$4 sm:$0xff]   ;;  %v829_v46 = vld [vmem:[#allocation7 + $0xd4] ss:$8 sps:$4 sm:$0xff]   ;;  %v831_v47 = vld [vmem:[#allocation7 + $0xd0] ss:$8 sps:$4 sm:$0xff]  }
  0x3e   :  { %v832_v48 = vld [vmem:[#allocation7 + $0xc4] ss:$8 sps:$4 sm:$0xff]   ;;  %v834_v49 = vld [vmem:[#allocation7 + $0xc0] ss:$8 sps:$4 sm:$0xff]   ;;  %v835_v50 = vld [vmem:[#allocation7 + $0xb4] ss:$8 sps:$4 sm:$0xff]  }
  0x3f   :  { %v837_v51 = vld [vmem:[#allocation7 + $0xb0] ss:$8 sps:$4 sm:$0xff]   ;;  %v838_v52 = vld [vmem:[#allocation7 + $0xa4] ss:$8 sps:$4 sm:$0xff]   ;;  %v840_v53 = vld [vmem:[#allocation7 + $0xa0] ss:$8 sps:$4 sm:$0xff]  }
  0x40   :  { %422 = vmatpush1.bf16.msra.mxu1 %v807_v24  ;;  %v841_v54 = vld [vmem:[#allocation7 + $0x94] ss:$8 sps:$4 sm:$0xff]   ;;  %v843_v55 = vld [vmem:[#allocation7 + $0x90] ss:$8 sps:$4 sm:$0xff]   ;;  %v844_v56 = vld [vmem:[#allocation7 + $0x84] ss:$8 sps:$4 sm:$0xff]  }
  0x41   :  { %423 = vmatprep.subr.bf16.mxu1 %v808_v25  ;;  %v846_v57 = vld [vmem:[#allocation7 + $0x80] ss:$8 sps:$4 sm:$0xff]  }
  0x42   :  { %v181_v61 = vld [vmem:[%s1106_s3] sm:$0x3] }
  0x43   :  { %v195_v62 = vld [vmem:[%s1107_s4] sm:$0x3]  ;;  %v186_v63 = vrot.slane %v181_v61, %v1062_v7  ;;  %v190_v0 = vrot.slane %v181_v61, %v1064_v8 }
  0x44   :  { %424 = vmatpush1.bf16.msra.mxu1 %v810_v26  ;;  %v200_v3 = vrot.slane %v195_v62, %v1062_v7  ;;  %v204_v4 = vrot.slane %v195_v62, %v1064_v8 }
  0x45   :  { %425 = vmatprep.subr.bf16.mxu1 %v811_v27  ;;  %v847_v27 = vld [vmem:[#allocation8 + $0x78] sm:$0xff]  }
  0x46   :  { %764 = vmatprep.subr.bf16.mxu0 %v847_v27 }
  0x48   :  { %426 = vmatpush1.bf16.msra.mxu1 %v813_v28  ;;  %v848_v28 = vld [vmem:[#allocation8 + $0x38] sm:$0xff]  }
  0x49   :  { %427 = vmatprep.subr.bf16.mxu1 %v814_v29  ;;  %765 = vmatpush3.bf16.msra.mxu0 %v848_v28 }
  0x4c   :  { %428 = vmatpush1.bf16.msra.mxu1 %v816_v30 }
  0x4d   :  { %429 = vmatprep.subr.bf16.mxu1 %v817_v31 }
  0x50   :  { %430 = vmatpush1.bf16.msra.mxu1 %v819_v32 }
  0x51   :  { %431 = vmatprep.subr.bf16.mxu1 %v820_v33 }
  0x54   :  { %432 = vmatpush1.bf16.msra.mxu1 %v822_v34 }
  0x55   :  { %433 = vmatprep.subr.bf16.mxu1 %v823_v35 }
  0x58   :  { %434 = vmatpush2.bf16.msra.mxu1 %v825_v36  ;;  %v849_v36 = vld [vmem:[#allocation8 + $0x70] sm:$0xff]  }
  0x59   :  { %435 = vmatprep.subr.bf16.mxu1 %v826_v44  ;;  %766 = vmatprep.subr.bf16.mxu0 %v849_v36  ;;  %v857_v44 = vld [vmem:[#allocation8 + $0x50] sm:$0xff]  }
  0x5c   :  { %436 = vmatpush2.bf16.msra.mxu1 %v828_v45  ;;  %v858_v45 = vld [vmem:[#allocation8 + $0x10] sm:$0xff]  }
  0x5d   :  { %437 = vmatprep.subr.bf16.mxu1 %v829_v46  ;;  %v859_v46 = vld [vmem:[#allocation8 + $0x48] sm:$0xff]  }
  0x60   :  { %438 = vmatpush2.bf16.msra.mxu1 %v831_v47  ;;  %v860_v47 = vld [vmem:[#allocation8 + $0x8] sm:$0xff]  }
  0x61   :  { %439 = vmatprep.subr.bf16.mxu1 %v832_v48  ;;  %v861_v48 = vld [vmem:[#allocation8 + $0x40] sm:$0xff]  }
  0x64   :  { %440 = vmatpush2.bf16.msra.mxu1 %v834_v49  ;;  %v862_v49 = vld [vmem:[#allocation8] sm:$0xff]  }
  0x65   :  { %441 = vmatprep.subr.bf16.mxu1 %v835_v50 }
  0x68   :  { %442 = vmatpush2.bf16.msra.mxu1 %v837_v51 }
  0x69   :  { %443 = vmatprep.subr.bf16.mxu1 %v838_v52 }
  0x6c   :  { %444 = vmatpush2.bf16.msra.mxu1 %v840_v53  ;;  %v474_v53 = vld [vmem:[%s1110_s7] sm:$0x3] }
  0x6d   :  { %445 = vmatprep.subr.bf16.mxu1 %v841_v54  ;;  %v488_v54 = vld [vmem:[%s1111_s8] sm:$0x3] }
  0x70   :  { %446 = vmatpush2.bf16.msra.mxu1 %v843_v55  ;;  %v479_v55 = vrot.slane %v474_v53, %v1062_v7 }
  0x71   :  { %447 = vmatprep.subr.bf16.mxu1 %v844_v56  ;;  %v483_v56 = vrot.slane %v474_v53, %v1064_v8 }
  0x74   :  { %448 = vmatpush2.bf16.msra.mxu1 %v846_v57 }
  0xf9   :  { %v157_v12 = vpop.f32.mrf.mxu0 }
  0xfa   :  { %v158_v14 = vadd.f32 %v157_v12, %v102_v10 }
  0xfb   :  { %v159_v13 = vpop.f32.mrf.mxu0 }
  0xfc   :  { %v160_v15 = vadd.f32 %v159_v13, %v106_v11 }
  0xfd   :  { %v161_v16 = vpop.f32.mrf.mxu0 }
  0xfe   :  { %v164_v17 = vadd.f32 %v160_v15, %v158_v14 }
  0xff   :  { %v162_v18 = vpop.f32.mrf.mxu0 }
 0x100   :  { %165 = vadd.xlane.f32.xlu0 %v164_v17  ;;  %v245_v17 = vld [vmem:[%s1109_s6] sm:$0x3] }
 0x101   :  { %v250_v18 = vrot.slane %v245_v17, %v1062_v7  ;;  %v254_v19 = vrot.slane %v245_v17, %v1064_v8 }
 0x189   :  { %v166_v37 = vpop.xlane.xlu0 %165 }
 0x18a   :  { %v168_v38 = vmul.f32 0.00390625, %v166_v37  ;;  %v850_v37 = vld [vmem:[#allocation8 + $0x30] sm:$0xff]  }
 0x18b   :  { %767 = vmatpush3.bf16.msra.mxu0 %v850_v37 }
 0x18c   :  { %v169_v39 = vsub.f32 %v158_v14, %v168_v38  ;;  %v170_v40 = vsub.f32 %v160_v15, %v168_v38  ;;  %v851_v38 = vld [vmem:[#allocation8 + $0x68] sm:$0xff]  }
 0x18d   :  { %768 = vmatprep.subr.bf16.mxu0 %v851_v38 }
 0x18e   :  { %v171_v41 = vmul.f32 %v169_v39, %v169_v39  ;;  %v172_v42 = vmul.f32 %v170_v40, %v170_v40 }
 0x190   :  { %v173_v43 = vadd.f32 %v172_v42, %v171_v41  ;;  %v854_v41 = vld [vmem:[#allocation8 + $0x20] sm:$0xff]   ;;  %v855_v42 = vld [vmem:[#allocation8 + $0x58] sm:$0xff]  }
 0x192   :  { %174 = vadd.xlane.f32.xlu0 %v173_v43  ;;  %v856_v43 = vld [vmem:[#allocation8 + $0x18] sm:$0xff]  }
 0x21b   :  { %v175_v58 = vpop.xlane.xlu0 %174 }
 0x21c   :  { %v176_v59 = vmul.f32 0.00390625, %v175_v58 }
 0x21e   :  { %v177_v60 = vadd.f32 1e-05, %v176_v59  ;;  %v493_v59 = vrot.slane %v488_v54, %v1062_v7  ;;  %v747_v7 = vld [vmem:[%s1113_s10] ss:$0 sm:$0xff]  ;;  %s951_s10 = scalar_lea.vmem %s702_s27, 128 }
 0x21f   :  { %p952_p6 = scmp.ne.s32.totalorder %s702_s27, %s951_s10  ;;  %p957_p8 = scmp.lt.s32.totalorder %s951_s10, %s951_s10 }
 0x220   :  { %863 = vrsqrt.f32 %v177_v60  ;;  %v497_v60 = vrot.slane %v488_v54, %v1064_v8 }
 0x221   :  { %p958_p9 = por %p957_p8, %p956_p7 }
 0x223   :  { %p959_p10 = pnand %p958_p9, %p952_p6 }
 0x22d   :  { %v864_v1 = vpop.eup %863 }
 0x22e   :  { %v180_v2 = vmul.f32 %v864_v1, %v170_v40  ;;  %v179_v6 = vmul.f32 %v864_v1, %v169_v39  ;;  %v852_v39 = vld [vmem:[#allocation8 + $0x28] sm:$0xff]   ;;  %v853_v40 = vld [vmem:[#allocation8 + $0x60] sm:$0xff]  }
 0x22f   :  { %769 = vmatpush3.bf16.msra.mxu0 %v852_v39 }
 0x230   :  { %v194_v9 = vmul.f32 %v190_v0, %v180_v2  ;;  %v193_v10 = vmul.f32 %v186_v63, %v179_v6  ;;  %770 = vmatprep.subr.bf16.mxu0 %v853_v40 }
 0x232   :  { %v208_v11 = vadd.f32 %v204_v4, %v194_v9  ;;  %v207_v12 = vadd.f32 %v200_v3, %v193_v10  ;;  %v682_v10 = vand.u32 127, %v99_v5 }
 0x233   :  { %771 = vmatpush3.bf16.msra.mxu0 %v854_v41 }
 0x234   :  { %v210_v13 = vmax.f32 %v208_v11, 0.0  ;;  %v209_v14 = vmax.f32 %v207_v12, 0.0  ;;  %772 = vmatprep.subr.bf16.mxu0 %v855_v42  ;;  %vm683_vm1 = vcmp.lt.s32.totalorder %v682_v10, 3 }
 0x236   :  { %v212_v15 = vpack.c.bf16 %v210_v13, %v210_v13  ;;  %v211_v16 = vpack.c.bf16 %v209_v14, %v209_v14 }
 0x237   :  { %773 = vmatpush3.bf16.msra.mxu0 %v856_v43 }
 0x238   :  { %449 = vmatprep.mubr.bf16.mxu1 %v212_v15  ;;  %774 = vmatprep.subr.bf16.mxu0 %v857_v44 }
 0x239   :  { %450 = vmatmul.mubr.bf16.vlgmr.msra.gmra.mxu1 %v211_v16 }
 0x23b   :  { %775 = vmatpush3.bf16.msra.mxu0 %v858_v45 }
 0x23c   :  { %776 = vmatprep.subr.bf16.mxu0 %v859_v46 }
 0x23f   :  { %777 = vmatpush3.bf16.msra.mxu0 %v860_v47 }
 0x240   :  { %778 = vmatprep.subr.bf16.mxu0 %v861_v48 }
 0x243   :  { %779 = vmatpush3.bf16.msra.mxu0 %v862_v49 }
 0x2f9   :  { %v451_v20 = vpop.f32.mrf.mxu1 }
 0x2fa   :  { %v452_v22 = vadd.f32 %v451_v20, %v250_v18 }
 0x2fb   :  { %v453_v21 = vpop.f32.mrf.mxu1 }
 0x2fc   :  { %v454_v23 = vadd.f32 %v453_v21, %v254_v19 }
 0x2fd   :  { %v455_v24 = vpop.f32.mrf.mxu1 }
 0x2fe   :  { %v458_v25 = vadd.f32 %v454_v23, %v452_v22 }
 0x2ff   :  { %v456_v26 = vpop.f32.mrf.mxu1 }
 0x300   :  { %459 = vadd.xlane.f32.xlu1 %v458_v25 }
 0x389   :  { %v460_v29 = vpop.xlane.xlu1 %459 }
 0x38a   :  { %v461_v30 = vmul.f32 0.00390625, %v460_v29 }
 0x38c   :  { %v462_v31 = vsub.f32 %v452_v22, %v461_v30  ;;  %v463_v32 = vsub.f32 %v454_v23, %v461_v30 }
 0x38e   :  { %v464_v33 = vmul.f32 %v462_v31, %v462_v31  ;;  %v465_v34 = vmul.f32 %v463_v32, %v463_v32 }
 0x390   :  { %v466_v35 = vadd.f32 %v465_v34, %v464_v33 }
 0x392   :  { %467 = vadd.xlane.f32.xlu1 %v466_v35 }
 0x41b   :  { %v468_v50 = vpop.xlane.xlu1 %467 }
 0x41c   :  { %v469_v51 = vmul.f32 0.00390625, %v468_v50 }
 0x41e   :  { %v470_v52 = vadd.f32 1e-05, %v469_v51 }
 0x420   :  { %865 = vrsqrt.f32 %v470_v52 }
 0x42d   :  { %v866_v57 = vpop.eup %865 }
 0x42e   :  { %v473_v58 = vmul.f32 %v866_v57, %v463_v32  ;;  %v472_v61 = vmul.f32 %v866_v57, %v462_v31 }
 0x430   :  { %v487_v62 = vmul.f32 %v483_v56, %v473_v58  ;;  %v486_v63 = vmul.f32 %v479_v55, %v472_v61 }
 0x432   :  { %v501_v0 = vadd.f32 %v497_v60, %v487_v62  ;;  %v500_v1 = vadd.f32 %v493_v59, %v486_v63 }
 0x434   :  { %v503_v2 = vmax.f32 %v501_v0, 0.0  ;;  %v502_v3 = vmax.f32 %v500_v1, 0.0 }
 0x436   :  { %v505_v4 = vpack.c.bf16 %v503_v2, %v503_v2  ;;  %v504_v6 = vpack.c.bf16 %v502_v3, %v502_v3 }
 0x438   :  { %673 = vmatprep.mubr.bf16.mxu0 %v505_v4 }
 0x439   :  { %674 = vmatmul.mubr.bf16.vlgmr.msra.gmra.mxu0 %v504_v6 }
 0x4f9   :  { %v780_v9 = vpop.f32.mrf.mxu0 }
 0x4fb   :  { %v781_v11 = vpop.f32.mrf.mxu0 }
 0x4fc   :  { %v782_v8 = vadd.f32 %v781_v11, %v780_v9 }
 0x4fd   :  { %v783_v12 = vpop.f32.mrf.mxu0 }
 0x4fe   :  { %v676_v13 = vadd.f32 %v782_v8, %v747_v7 }
 0x4ff   :  { %v784_v14 = vpop.f32.mrf.mxu0 }
 0x500   :  { %v684_v15 = vsel %vm683_vm1, %v676_v13, -1e+30 }
 0x501   :  { %685 = vmax.xlane.f32.xlu0 %v684_v15 }
 0x58a   :  { %v686_v16 = vpop.xlane.xlu0 %685 }
 0x58b   :  { %v687_v17 = vsub.f32 %v684_v15, %v686_v16 }
 0x58d   :  { %v688_v18 = vmul.f32 1.442695, %v687_v17 }
 0x58f   :  { %867 = vpow2.f32 %v688_v18 }
 0x59c   :  { %v868_v19 = vpop.eup %867 }
 0x59d   :  { %690 = vadd.xlane.f32.xlu1 %v868_v19 }
 0x626   :  { %v691_v20 = vpop.xlane.xlu1 %690 }
 0x627   :  { %869 = vrcp.f32 %v691_v20 }
 0x634   :  { %v870_v5 = vpop.eup %869 }
 0x635   :  { %v693_v21 = vmul.f32 %v870_v5, %v868_v19 }
 0x637   :  { %694 = vst [vmem:[#allocation10] sm:$0xff] %v693_v21 }
 0x638   :  { %962 = shalt.err (!%p959_p10)
}
 0x639   :  { %704 = dma.vmem_to_hbm [thread:$0]  %s702_s27, 128, %s1114_s11, [#allocation4]  }
 0x63a   :  { %977 = dma.done.wait [#allocation4], 128  }
 0x63b   :  { %978 = vsyncadd [#allocation4], 4294967168 }
 0x63c   :  { %708 = vsyncpa [#allocation3], 1 }
 0x63d   :  { %709 = vsyncpa [#allocation6], 1 }
 0x63e   :  { %710 = vsyncpa [#allocation9], 1 }
 0x63f   :  { %711 = vsyncpa [#allocation4], 1 }

</bundles_post_ra>
